<compile_context>
chip_gen: v5e
topology: v5e:2x2
jax: 0.10.0
libtpu: 0.0.40
codegen_flags: <defaults>
</compile_context>

<pallas_src>
import functools
import math

import jax
import jax.numpy as jnp
from jax.experimental import pallas as pl
from jax.experimental.pallas import tpu as pltpu


def _circle_kernel(margin, scale, f_ref, w_ref, invf_ref, invw_ref, tgt_ref,
                   out_ref):
    # f_ref: (tb, D), w_ref: (tc, D), invf_ref: (tb, 1), invw_ref: (1, tc),
    # tgt_ref: (tb, 1) int32, out_ref: (tb, tc) f32.
    f = f_ref[...]
    w = w_ref[...]

    # Contract dim 1 against dim 1 directly (no explicit transpose of the
    # weight tile); MXU matmul with f32 accumulation.
    sim = jax.lax.dot_general(
        f, w,
        dimension_numbers=(((1,), (1,)), ((), ())),
        preferred_element_type=jnp.float32)

    # Apply precomputed inverse L2 norms as an outer-product rescale of sim.
    sim = sim * invf_ref[...] * invw_ref[...]

    m = jnp.float32(margin)
    s = jnp.float32(scale)

    tb, tc = out_ref.shape
    # Global class id of each column in this tile (grid axis 0 tiles C).
    col0 = pl.program_id(0) * tc
    class_ids = col0 + jax.lax.broadcasted_iota(jnp.int32, (tb, tc), 1)
    mask = class_ids == tgt_ref[...]                       # (tb, tc) bool

    # Fused epilogue: one select picks the positive/negative branch, one relu,
    # one select for delta, two multiplies (all VPU; MXU/DMA dominate).
    a = jnp.where(mask, (jnp.float32(1.0) + m) - sim, sim + m)
    delta = jnp.where(mask, jnp.float32(1.0) - m, m)
    out_ref[...] = s * jnp.maximum(a, jnp.float32(0.0)) * (sim - delta)


def _round_up(x, mult):
    return (x + mult - 1) // mult * mult


def _pick_tile(n, cap, mult):
    """Largest tile <= cap (multiple of `mult`), re-balanced to minimize padding."""
    t = min(cap, _round_up(n, mult))
    steps = -(-n // t)                       # ceil(n / t)
    t = _round_up(-(-n // steps), mult)      # balance across steps
    return t


def _tile_vmem_bytes(tb, tc, d):
    # Double-buffered f32 input/output tiles (+ tiny inv/target vectors).
    return 2 * 4 * (tb * d + tc * d + tb * tc + 2 * tb + tc)


def circle_forward(features, weight, targets, *, margin=0.25, scale=80.0):
    """features: (B, D), weight: (C, D), targets: (B,) int -> (B, C) f32 logits."""
    B, D = features.shape
    C, D2 = weight.shape
    assert D == D2

    features = features.astype(jnp.float32)
    weight = weight.astype(jnp.float32)

    # Precompute inverse L2 norms once (tiny vectors); clamping the sum of
    # squares with eps^2 matches F.normalize's max(||x||, eps) exactly.
    eps2 = jnp.float32(1e-12) * jnp.float32(1e-12)
    inv_f = 1.0 / jnp.sqrt(
        jnp.maximum(jnp.sum(features * features, axis=-1, keepdims=True), eps2))
    inv_w = (1.0 / jnp.sqrt(
        jnp.maximum(jnp.sum(weight * weight, axis=-1, keepdims=True), eps2))
             ).reshape(1, C)

    # Tile sizes: sublane-aligned batch tile, lane-dense class tile; balanced
    # to minimize padding, then shrunk if needed to fit the VMEM budget.
    tb = _pick_tile(B, 512, 8)
    tc = _pick_tile(C, 512, 128)
    budget = 24 * 1024 * 1024
    while _tile_vmem_bytes(tb, tc, D) > budget and tc > 128:
        tc = max(128, _round_up(tc // 2, 128))
    while _tile_vmem_bytes(tb, tc, D) > budget and tb > 8:
        tb = max(8, _round_up(tb // 2, 8))
    # TODO(synk): for very large in_feat (D) the contraction dim could also be
    # tiled with an accumulator; untiled D is fine for typical head sizes.

    Bp = _round_up(B, tb)
    Cp = _round_up(C, tc)

    tgt = targets.astype(jnp.int32).reshape(B, 1)
    if Bp != B:
        features = jnp.pad(features, ((0, Bp - B), (0, 0)))
        inv_f = jnp.pad(inv_f, ((0, Bp - B), (0, 0)))
        tgt = jnp.pad(tgt, ((0, Bp - B), (0, 0)), constant_values=-1)
    if Cp != C:
        weight = jnp.pad(weight, ((0, Cp - C), (0, 0)))
        inv_w = jnp.pad(inv_w, ((0, 0), (0, Cp - C)))

    n_c = Cp // tc
    n_b = Bp // tb

    kernel = functools.partial(_circle_kernel, margin, scale)

    out = pl.pallas_call(
        kernel,
        out_shape=jax.ShapeDtypeStruct((Bp, Cp), jnp.float32),
        grid_spec=pltpu.PrefetchScalarGridSpec(
            num_scalar_prefetch=0,
            # C-tiles on the OUTER axis: the (tc, D) weight tile's block index
            # is constant over the inner batch loop, so it is not re-DMA'd.
            grid=(n_c, n_b),
            in_specs=[
                pl.BlockSpec((tb, D), lambda j, i: (i, 0)),   # features
                pl.BlockSpec((tc, D), lambda j, i: (j, 0)),   # weight (resident)
                pl.BlockSpec((tb, 1), lambda j, i: (i, 0)),   # inv feature norm
                pl.BlockSpec((1, tc), lambda j, i: (0, j)),   # inv weight norm
                pl.BlockSpec((tb, 1), lambda j, i: (i, 0)),   # targets
            ],
            out_specs=pl.BlockSpec((tb, tc), lambda j, i: (i, j)),
        ),
        compiler_params=pltpu.CompilerParams(
            dimension_semantics=("parallel", "parallel"),
            vmem_limit_bytes=32 * 1024 * 1024),
        cost_estimate=pl.CostEstimate(
            flops=2 * Bp * Cp * D,
            transcendentals=0,
            bytes_accessed=4 * (n_c * Bp * D + Cp * D + Bp * Cp)),
    )(features, weight, inv_f, inv_w, tgt)

    return out[:B, :C]
    # TODO(synk): forward-only; a custom_vjp would need to treat alpha_p/alpha_n
    # as constants (PyTorch's .detach()).


def _reference(features, weight, targets, margin=0.25, scale=80.0):
    eps = 1e-12
    f_n = features / jnp.maximum(
        jnp.linalg.norm(features, axis=-1, keepdims=True), eps)
    w_n = weight / jnp.maximum(
        jnp.linalg.norm(weight, axis=-1, keepdims=True), eps)
    sim = f_n @ w_n.T
    alpha_p = jax.nn.relu(-sim + 1 + margin)
    alpha_n = jax.nn.relu(sim + margin)
    s_p = scale * alpha_p * (sim - (1 - margin))
    s_n = scale * alpha_n * (sim - margin)
    onehot = jax.nn.one_hot(targets, weight.shape[0], dtype=jnp.float32)
    return onehot * s_p + (1.0 - onehot) * s_n


if __name__ == "__main__":
    root = jax.random.PRNGKey(0)
    k1, k2, k3 = jax.random.split(root, 3)

    def make_case(key, B, D, C):
        k_f, k_w, k_t = jax.random.split(key, 3)
        bound = 1.0 / (D ** 0.5)
        features = jax.random.normal(k_f, (B, D), dtype=jnp.float32)
        weight = jax.random.uniform(k_w, (C, D), dtype=jnp.float32,
                                    minval=-bound, maxval=bound)
        targets = jax.random.randint(k_t, (B,), 0, C, dtype=jnp.int32)
        return features, weight, targets

    # Case 1: tiny shapes (single batch tile, single lane-dense class tile).
    f1, w1, t1 = make_case(k1, 8, 32, 16)
    out1 = jax.block_until_ready(
        circle_forward(f1, w1, t1, margin=0.25, scale=80.0))
    ref1 = _reference(f1, w1, t1)
    assert out1.shape == (8, 16) and out1.dtype == jnp.float32
    assert jnp.allclose(out1, ref1, atol=1e-4, rtol=1e-4), "mismatch (case 1)"

    # Case 2: multiple class tiles (column-offset path) + class padding.
    f2, w2, t2 = make_case(k2, 16, 32, 600)
    out2 = jax.block_until_ready(
        circle_forward(f2, w2, t2, margin=0.25, scale=80.0))
    ref2 = _reference(f2, w2, t2)
    assert out2.shape == (16, 600)
    assert jnp.allclose(out2, ref2, atol=1e-4, rtol=1e-4), "mismatch (case 2)"

    # Case 3: multiple batch tiles + batch padding (balanced tb).
    f3, w3, t3 = make_case(k3, 600, 32, 16)
    out3 = jax.block_until_ready(
        circle_forward(f3, w3, t3, margin=0.25, scale=80.0))
    ref3 = _reference(f3, w3, t3)
    assert out3.shape == (600, 16)
    assert jnp.allclose(out3, ref3, atol=1e-4, rtol=1e-4), "mismatch (case 3)"

    print("KERNEL_OK")
</pallas_src>

<mosaic_0001>
module attributes {stable_mosaic.version = 11 : i64} {
  func.func @_circle_kernel(%arg0: i32, %arg1: i32, %arg2: memref<8x32xf32, #tpu.memory_space<vmem>>, %arg3: memref<128x32xf32, #tpu.memory_space<vmem>>, %arg4: memref<8x1xf32, #tpu.memory_space<vmem>>, %arg5: memref<1x128xf32, #tpu.memory_space<vmem>>, %arg6: memref<8x1xi32, #tpu.memory_space<vmem>>, %arg7: memref<8x128xf32, #tpu.memory_space<vmem>>) attributes {dimension_semantics = [#tpu.dimension_semantics<parallel>, #tpu.dimension_semantics<parallel>], iteration_bounds = array<i64: 1, 1>, scalar_prefetch = 0 : i64, scratch_operands = 0 : i64, tpu.core_type = #tpu.core_type<tc>, window_params = [{transform_indices = @transform_0, window_bounds = array<i64: 8, 32>}, {transform_indices = @transform_1, window_bounds = array<i64: 128, 32>}, {transform_indices = @transform_2, window_bounds = array<i64: 8, 1>}, {transform_indices = @transform_3, window_bounds = array<i64: 1, 128>}, {transform_indices = @transform_4, window_bounds = array<i64: 8, 1>}, {transform_indices = @transform_5, window_bounds = array<i64: 8, 128>}]} {
    %c0 = arith.constant 0 : index
    %c0_0 = arith.constant 0 : index
    %0 = vector.load %arg2[%c0, %c0_0] : memref<8x32xf32, #tpu.memory_space<vmem>>, vector<8x32xf32>
    %c0_1 = arith.constant 0 : index
    %c0_2 = arith.constant 0 : index
    %1 = vector.load %arg3[%c0_1, %c0_2] : memref<128x32xf32, #tpu.memory_space<vmem>>, vector<128x32xf32>
    %cst = arith.constant dense<0.000000e+00> : vector<8x128xf32>
    %2 = tpu.matmul %0, %1, %cst {dimension_numbers = #tpu.dot_dimension_numbers<[1], [1], [0], [0], [0, 0, 1, 0], [], []>} : vector<8x32xf32>, vector<128x32xf32>, vector<8x128xf32> -> vector<8x128xf32>
    %c0_3 = arith.constant 0 : index
    %c0_4 = arith.constant 0 : index
    %3 = vector.load %arg4[%c0_3, %c0_4] : memref<8x1xf32, #tpu.memory_space<vmem>>, vector<8x1xf32>
    %4 = vector.broadcast %3 : vector<8x1xf32> to vector<8x128xf32>
    %5 = arith.mulf %2, %4 : vector<8x128xf32>
    %c0_5 = arith.constant 0 : index
    %c0_6 = arith.constant 0 : index
    %6 = vector.load %arg5[%c0_5, %c0_6] : memref<1x128xf32, #tpu.memory_space<vmem>>, vector<1x128xf32>
    %7 = vector.broadcast %6 : vector<1x128xf32> to vector<8x128xf32>
    %8 = arith.mulf %5, %7 : vector<8x128xf32>
    %c128_i32 = arith.constant 128 : i32
    %9 = arith.muli %arg0, %c128_i32 : i32
    %10 = tpu.iota {dimensions = array<i32: 1>} : vector<8x128xi32>
    %11 = vector.broadcast %9 : i32 to vector<8x128xi32>
    %12 = arith.addi %11, %10 : vector<8x128xi32>
    %c0_7 = arith.constant 0 : index
    %c0_8 = arith.constant 0 : index
    %13 = vector.load %arg6[%c0_7, %c0_8] : memref<8x1xi32, #tpu.memory_space<vmem>>, vector<8x1xi32>
    %14 = vector.broadcast %13 : vector<8x1xi32> to vector<8x128xi32>
    %15 = arith.cmpi eq, %12, %14 : vector<8x128xi32>
    %cst_9 = arith.constant 1.000000e+00 : f32
    %cst_10 = arith.constant 2.500000e-01 : f32
    %16 = arith.addf %cst_9, %cst_10 : f32
    %17 = vector.broadcast %16 : f32 to vector<8x128xf32>
    %18 = arith.subf %17, %8 : vector<8x128xf32>
    %cst_11 = arith.constant 2.500000e-01 : f32
    %19 = vector.broadcast %cst_11 : f32 to vector<8x128xf32>
    %20 = arith.addf %8, %19 : vector<8x128xf32>
    %21 = arith.select %15, %18, %20 : vector<8x128xi1>, vector<8x128xf32>
    %cst_12 = arith.constant 1.000000e+00 : f32
    %cst_13 = arith.constant 2.500000e-01 : f32
    %22 = arith.subf %cst_12, %cst_13 : f32
    %cst_14 = arith.constant 2.500000e-01 : f32
    %23 = vector.broadcast %22 : f32 to vector<8x128xf32>
    %24 = vector.broadcast %cst_14 : f32 to vector<8x128xf32>
    %25 = arith.select %15, %23, %24 : vector<8x128xi1>, vector<8x128xf32>
    %cst_15 = arith.constant 0.000000e+00 : f32
    %26 = vector.broadcast %cst_15 : f32 to vector<8x128xf32>
    %27 = arith.maximumf %21, %26 : vector<8x128xf32>
    %cst_16 = arith.constant 8.000000e+01 : f32
    %28 = vector.broadcast %cst_16 : f32 to vector<8x128xf32>
    %29 = arith.mulf %28, %27 : vector<8x128xf32>
    %30 = arith.subf %8, %25 : vector<8x128xf32>
    %31 = arith.mulf %29, %30 : vector<8x128xf32>
    %c0_17 = arith.constant 0 : index
    %c0_18 = arith.constant 0 : index
    %32 = vector.load %arg7[%c0_17, %c0_18] : memref<8x128xf32, #tpu.memory_space<vmem>>, vector<8x128xf32>
    tpu.vector_store %arg7[%c0_17, %c0_18], %31 {strides = array<i32>} : memref<8x128xf32, #tpu.memory_space<vmem>>, vector<8x128xf32>,
    return
  }
  func.func @transform_0(%arg0: i32, %arg1: i32) -> (i32, i32) {
    %c0_i32 = arith.constant 0 : i32
    %c0_i32_0 = arith.constant 0 : i32
    return %arg1, %c0_i32 : i32, i32
  }
  func.func @transform_1(%arg0: i32, %arg1: i32) -> (i32, i32) {
    %c0_i32 = arith.constant 0 : i32
    %c0_i32_0 = arith.constant 0 : i32
    return %arg0, %c0_i32 : i32, i32
  }
  func.func @transform_2(%arg0: i32, %arg1: i32) -> (i32, i32) {
    %c0_i32 = arith.constant 0 : i32
    %c0_i32_0 = arith.constant 0 : i32
    return %arg1, %c0_i32 : i32, i32
  }
  func.func @transform_3(%arg0: i32, %arg1: i32) -> (i32, i32) {
    %c0_i32 = arith.constant 0 : i32
    %c0_i32_0 = arith.constant 0 : i32
    return %c0_i32, %arg0 : i32, i32
  }
  func.func @transform_4(%arg0: i32, %arg1: i32) -> (i32, i32) {
    %c0_i32 = arith.constant 0 : i32
    %c0_i32_0 = arith.constant 0 : i32
    return %arg1, %c0_i32 : i32, i32
  }
  func.func @transform_5(%arg0: i32, %arg1: i32) -> (i32, i32) {
    %c0_i32 = arith.constant 0 : i32
    return %arg1, %arg0 : i32, i32
  }
}

</mosaic_0001>

<bundles_post_ra>
// kernel: tpu_custom_call.1
= control target key start
LH: loop header
LB: loop body
LE: loop exit
PB: predicated region body
PF: predicated region fallthrough
CT: control target
= control target key end

     0   :  { %vm38_vm0 = vcmask 261120   ;;  %s318_s0 = inlined_call_operand.vmem [shape: f32[8,32], index: 0, kind: input, shape index: {}]   ;;  %s319_s1 = inlined_call_operand.vmem [shape: f32[128,32], index: 1, kind: input, shape index: {}]   ;;  %s320_s2 = inlined_call_operand.vmem [shape: f32[8,1], index: 2, kind: input, shape index: {}]   ;;  %s321_s3 = inlined_call_operand.vmem [shape: f32[1,128], index: 3, kind: input, shape index: {}]   ;;  %s322_s4 = inlined_call_operand.vmem [shape: s32[8,1], index: 4, kind: input, shape index: {}]   ;;  %s323_s5 = inlined_call_operand.hbm [shape: f32[8,128], index: 5, kind: output, shape index: {}]  }
   0x1   :  { %v37_v0 = vld [vmem:[%s319_s1 + $0x78] sm:$0xff]  ;;  %v36_v1 = vld [vmem:[%s319_s1 + $0x70] sm:$0xff] }
   0x2   :  { %157 = vmatpush.xpose.msk.msra.mxu0 %vm38_vm0, %v37_v0 }
   0x3   :  { %10 = vsyncpa [#allocation3], 0  ;;  %v35_v2 = vld [vmem:[%s319_s1 + $0x68] sm:$0xff]  ;;  %v34_v3 = vld [vmem:[%s319_s1 + $0x60] sm:$0xff]  ;;  %v205_v10 = vmov 0   ;;  %v123_v21 = vlaneseq  ;;  %v206_v32 = vmov 0.25  }
   0x4   :  { %v33_v4 = vld [vmem:[%s319_s1 + $0x58] sm:$0xff]  ;;  %v32_v5 = vld [vmem:[%s319_s1 + $0x50] sm:$0xff]  ;;  %v31_v6 = vld [vmem:[%s319_s1 + $0x48] sm:$0xff]  ;;  %177 = vset.pattern.permute.xlu0 %v205_v10  ;;  %s148_s8 = sshll.u32 %s323_s5, 4  ;;  %s149_s8 = int_to_ptr.hbm [resolvable:$true] %s148_s8 }
   0x5   :  { %v30_v7 = vld [vmem:[%s319_s1 + $0x40] sm:$0xff]  ;;  %v29_v9 = vld [vmem:[%s319_s1 + $0x38] sm:$0xff]  ;;  %v28_v11 = vld [vmem:[%s319_s1 + $0x30] sm:$0xff]  ;;  %v124_v25 = vand.u32 127, %v123_v21 }
   0x6   :  { %158 = vmatpush.xpose.msk.msra.mxu0 %vm38_vm0, %v36_v1  ;;  %v110_v8 = vld [vmem:[%s320_s2] sm:$0xff]  ;;  %v27_v13 = vld [vmem:[%s319_s1 + $0x28] sm:$0xff]  ;;  %v25_v15 = vld [vmem:[%s319_s1 + $0x18] sm:$0xff] }
   0x7   :  { %113 = vperm.xlu0 %177, %v110_v8   ;;  %v127_v12 = vld [vmem:[%s322_s4] sm:$0xff]  ;;  %v24_v16 = vld [vmem:[%s319_s1 + $0x10] sm:$0xff]  ;;  %v23_v17 = vld [vmem:[%s319_s1 + $0x8] sm:$0xff] }
   0x8   :  { %v26_v14 = vld [vmem:[%s319_s1 + $0x20] sm:$0xff] }
   0x9   :  { %v22_v18 = vld [vmem:[%s319_s1] sm:$0xff] }
   0xa   :  { %159 = vmatpush.xpose.msk.msra.mxu0 %vm38_vm0, %v35_v2  ;;  %v21_v19 = vld [vmem:[%s318_s0] sm:$0xff]  ;;  %s207_s0 = smov [#allocation2]  }
   0xb   :  { %v178_v22 = vld [vmem:[%s321_s3] ss:$0 sm:$0xff]  ;;  %s146_s1 = sshll.u32 %s207_s0, 4  ;;  %s147_s1 = int_to_ptr.vmem [resolvable:$true] %s146_s1 }
   0xe   :  { %160 = vmatpush.xpose.msk.msra.mxu0 %vm38_vm0, %v34_v3 }
   0xf   :  { %129 = vperm.xlu0 %177, %v127_v12  }
  0x12   :  { %161 = vmatpush.xpose.msk.msra.mxu0 %vm38_vm0, %v33_v4 }
  0x16   :  { %162 = vmatpush.xpose.msk.msra.mxu0 %vm38_vm0, %v32_v5 }
  0x1a   :  { %163 = vmatpush.xpose.msk.msra.mxu0 %vm38_vm0, %v31_v6 }
  0x1e   :  { %164 = vmatpush.xpose.msk.msra.mxu0 %vm38_vm0, %v30_v7 }
  0x22   :  { %165 = vmatpush.xpose.msk.msra.mxu0 %vm38_vm0, %v29_v9 }
  0x26   :  { %166 = vmatpush.xpose.msk.msra.mxu0 %vm38_vm0, %v28_v11 }
  0x2a   :  { %167 = vmatpush.xpose.msk.msra.mxu0 %vm38_vm0, %v27_v13 }
  0x2e   :  { %168 = vmatpush.xpose.msk.msra.mxu0 %vm38_vm0, %v26_v14 }
  0x32   :  { %169 = vmatpush.xpose.msk.msra.mxu0 %vm38_vm0, %v25_v15 }
  0x36   :  { %170 = vmatpush.xpose.msk.msra.mxu0 %vm38_vm0, %v24_v16 }
  0x3a   :  { %171 = vmatpush.xpose.msk.msra.mxu0 %vm38_vm0, %v23_v17 }
  0x3e   :  { %172 = vmatpush.xpose.msk.msra.mxu0 %vm38_vm0, %v22_v18 }
  0x41   :  { %173 = vmatmul.msk.f32.vlgmr.msra.gmra.mxu0 %vm38_vm0, %v21_v19 }
  0x79   :  { %v114_v20 = vpop.permute.xlu0 %113 }
  0x81   :  { %v130_v26 = vpop.permute.xlu0 %129 }
  0x82   :  { %vm131_vm1 = vcmp.eq.s32.totalorder %v124_v25, %v130_v26 }
  0x83   :  { %v135_v33 = vsel %vm131_vm1, 0.75, %v206_v32 }
  0xbe   :  { %v107_v23 = vpop.f32.mrf.mxu0 }
  0xbf   :  { %v116_v24 = vmul.f32 %v114_v20, %v107_v23 }
  0xc1   :  { %v121_v27 = vmul.f32 %v178_v22, %v116_v24 }
  0xc3   :  { %v132_v28 = vsub.f32 1.25, %v121_v27  ;;  %v133_v29 = vadd.f32 0.25, %v121_v27  ;;  %v138_v35 = vsub.f32 %v121_v27, %v135_v33 }
  0xc5   :  { %v134_v30 = vsel %vm131_vm1, %v132_v28, %v133_v29 }
  0xc6   :  { %v136_v31 = vmax.f32 %v134_v30, 0.0 }
  0xc8   :  { %v137_v34 = vmul.f32 80.0, %v136_v31 }
  0xca   :  { %v139_v36 = vmul.f32 %v138_v35, %v137_v34 }
  0xcc   :  { %140 = vst [vmem:[#allocation2] sm:$0xff] %v139_v36 }
  0xcd   :  { %151 = dma.vmem_to_hbm [thread:$0]  %s147_s1, 128, %s149_s8, [#allocation3]  }
  0xce   :  { %203 = dma.done.wait [#allocation3], 128  }
  0xcf   :  { %204 = vsyncadd [#allocation3], 4294967168 }
  0xd0   :  { %156 = vsyncpa [#allocation3], 1 }

</bundles_post_ra>
